<compile_context>
chip_gen: v7x
topology: tpu7x:2x2x1
jax: 0.10.0
libtpu: 0.0.40
codegen_flags: <defaults>
</compile_context>

<pallas_src>
import math

import jax
import jax.numpy as jnp
from jax.experimental import pallas as pl
from jax.experimental.pallas import tpu as pltpu

D_MODEL = 32
N_HEADS = 4
D_HEAD = D_MODEL // N_HEADS
LN_EPS = 1e-5
LANES = 128
TOKENS_PER_ROW = LANES // D_MODEL      # 4 tokens per 128-lane vreg row


def _round_up(n, m):
    return -(-n // m) * m


def _cross_attn_kernel(x_ref, c_ref,
                       w_attn_ref, seg_ref, w1_ref, w2_ref,
                       vec_ref, b1_ref,
                       o_ref):
    """Fused folded-attention -> LN1 -> MLP -> LN2 on lane-dense (rows, 128) data."""
    x = x_ref[...].astype(jnp.float32)       # (BM, 128) = 4 tokens per row
    c = c_ref[...].astype(jnp.float32)

    b_av = vec_ref[0:1, :]                   # folded attention bias, tiled x4  (1,128)
    g1   = vec_ref[1:2, :]                   # LN1 gamma (tiled)
    be1  = vec_ref[2:3, :]                   # LN1 beta
    b2   = vec_ref[3:4, :]                   # MLP second bias
    g2   = vec_ref[4:5, :]                   # LN2 gamma
    be2  = vec_ref[5:6, :]                   # LN2 beta
    b1   = b1_ref[...]                       # MLP first bias (1, 512), f32

    seg = seg_ref[...]                       # (128,128) block-diag ones/32, f32

    # ---- attention: softmax over the single kv token == 1 exactly, so the whole
    #      MHA is one bf16 matmul with (Wv^T Wo^T) and bias (bv Wo^T + bo). ----
    attn = jnp.dot(c.astype(jnp.bfloat16), w_attn_ref[...],
                   preferred_element_type=jnp.float32) + b_av

    # ---- residual + LayerNorm1: per-token stats over each 32-lane segment.
    #      mu and E[h^2] are independent f32 matmuls (no serial chain); var by
    #      E[h^2]-mu^2 (activations here have |mean| << std, no cancellation). ----
    h = x + attn
    mu = jnp.dot(h, seg, preferred_element_type=jnp.float32)
    ex2 = jnp.dot(h * h, seg, preferred_element_type=jnp.float32)
    var = ex2 - mu * mu
    hn = (h - mu) * jax.lax.rsqrt(var + LN_EPS) * g1 + be1

    # ---- MLP: Linear(d,4d) -> ReLU -> Linear(4d,d), block-diag over 4 tokens.
    #      bf16 MXU inputs, f32 accumulation. ----
    m = jnp.dot(hn.astype(jnp.bfloat16), w1_ref[...],
                preferred_element_type=jnp.float32) + b1
    m = jnp.maximum(m, 0.0).astype(jnp.bfloat16)        # non-negative -> safe bf16
    m = jnp.dot(m, w2_ref[...], preferred_element_type=jnp.float32) + b2

    # ---- residual + LayerNorm2 ----
    h2 = hn + m
    mu2 = jnp.dot(h2, seg, preferred_element_type=jnp.float32)
    ex22 = jnp.dot(h2 * h2, seg, preferred_element_type=jnp.float32)
    var2 = ex22 - mu2 * mu2
    out = (h2 - mu2) * jax.lax.rsqrt(var2 + LN_EPS) * g2 + be2

    o_ref[...] = out.astype(o_ref.dtype)


def prepare_weights(params):
    """One-time weight prep (hoisted out of the per-call path).

    Folds the seq-len-1 attention into a single (32,32) matmul + bias, expands all
    32-wide weights into lane-dense block-diagonal tables (4 tokens / 128 lanes),
    and casts the MXU weight tables to bf16.
    """
    p = params
    eye = jnp.eye(TOKENS_PER_ROW, dtype=jnp.float32)

    w_av = p["wv_t"] @ p["wo_t"]                           # (32, 32)
    b_av = p["bv"] @ p["wo_t"] + p["bo"]                   # (1, 32)

    w_attn_bd = jnp.kron(eye, w_av).astype(jnp.bfloat16)   # (128, 128)  bf16
    w1_bd = jnp.kron(eye, p["w1_t"]).astype(jnp.bfloat16)  # (128, 512)  bf16
    w2_bd = jnp.kron(eye, p["w2_t"]).astype(jnp.bfloat16)  # (512, 128)  bf16
    # Segment-mean matrix stays f32 (LN-stat accuracy).
    seg = jnp.kron(eye, jnp.full((D_MODEL, D_MODEL), 1.0 / D_MODEL, jnp.float32))

    tile = lambda v: jnp.tile(v.reshape(1, -1), (1, TOKENS_PER_ROW))
    vec = jnp.concatenate(
        [tile(b_av), tile(p["ln1_w"]), tile(p["ln1_b"]),
         tile(p["b2"]), tile(p["ln2_w"]), tile(p["ln2_b"]),
         jnp.zeros((2, LANES), jnp.float32)],               # pad to 8 sublanes
        axis=0)                                             # (8, 128) f32
    b1_t = tile(p["b1"])                                    # (1, 512) f32

    return dict(w_attn_bd=w_attn_bd, seg=seg, w1_bd=w1_bd, w2_bd=w2_bd,
                vec=vec, b1_t=b1_t)


def _const_block_spec(a):
    """Whole-array, grid-invariant operand; single-buffer it when supported."""
    idx = lambda i: (0,) * a.ndim
    try:
        return pl.BlockSpec(a.shape, idx, pipeline_mode=pl.Buffered(1))
    except Exception:  # pragma: no cover - older jax without pipeline_mode
        return pl.BlockSpec(a.shape, idx)


def cross_attention_1d(x, cond_tokens, weights, *, max_block_rows=2048):
    """Fused CrossAttention1D forward.  x, cond_tokens: (B, 32) float32."""
    assert max_block_rows % 8 == 0
    B, D = x.shape
    assert D == D_MODEL and cond_tokens.shape == (B, D)

    # -------- lane-dense packing: 4 tokens per 128-lane row --------
    rows_needed = -(-B // TOKENS_PER_ROW)
    rows8 = _round_up(max(rows_needed, 1), 8)          # always (8k, 128) blocks
    # Aim for >= 2 grid steps (v7x megacore) while capping the block size.
    block_rows = min(max_block_rows, max(8, _round_up(-(-rows8 // 2), 8)))
    rows = _round_up(rows8, block_rows)
    b_pad = rows * TOKENS_PER_ROW
    if b_pad != B:
        pad = ((0, b_pad - B), (0, 0))
        x = jnp.pad(x, pad)
        cond_tokens = jnp.pad(cond_tokens, pad)
    x4 = x.reshape(rows, LANES)
    c4 = cond_tokens.reshape(rows, LANES)

    w = weights
    row_spec = pl.BlockSpec((block_rows, LANES), lambda i: (i, 0))

    # Advisory cost estimate so XLA can schedule neighbours around the call.
    flops = rows * (2 * LANES * LANES            # folded attention
                    + 4 * 2 * LANES * LANES      # 4 LN-stat matmuls
                    + 2 * LANES * 4 * LANES      # MLP up   (128x512)
                    + 2 * 4 * LANES * LANES)     # MLP down (512x128)
    bytes_accessed = 3 * rows * LANES * 4 + sum(
        int(a.size) * a.dtype.itemsize for a in w.values())
    cost = pl.CostEstimate(flops=flops,
                           transcendentals=2 * rows * LANES,
                           bytes_accessed=bytes_accessed)

    grid_spec = pltpu.PrefetchScalarGridSpec(
        num_scalar_prefetch=0,
        grid=(rows // block_rows,),
        in_specs=[row_spec, row_spec,
                  _const_block_spec(w["w_attn_bd"]), _const_block_spec(w["seg"]),
                  _const_block_spec(w["w1_bd"]), _const_block_spec(w["w2_bd"]),
                  _const_block_spec(w["vec"]), _const_block_spec(w["b1_t"])],
        out_specs=pl.BlockSpec((block_rows, LANES), lambda i: (i, 0)),
    )

    out4 = pl.pallas_call(
        _cross_attn_kernel,
        out_shape=jax.ShapeDtypeStruct((rows, LANES), x.dtype),
        grid_spec=grid_spec,
        compiler_params=pltpu.CompilerParams(
            dimension_semantics=("parallel",),      # disjoint output rows
            vmem_limit_bytes=40 * 1024 * 1024),     # <= v7x 64 MiB physical VMEM
        cost_estimate=cost,
    )(x4, c4, w["w_attn_bd"], w["seg"], w["w1_bd"], w["w2_bd"], w["vec"], w["b1_t"])

    return out4.reshape(b_pad, D)[:B]


def make_params(key):
    """Deterministic synthetic parameters (PyTorch layout, pre-transposed for kernel)."""
    ks = jax.random.split(key, 12)
    D, H4 = D_MODEL, 4 * D_MODEL

    def w(k, shape, s=0.05):
        return (s * jax.random.normal(k, shape)).astype(jnp.float32)

    in_proj_w = w(ks[0], (3 * D, D))          # torch: (3D, D)
    in_proj_b = w(ks[1], (3 * D,), 0.02)
    out_w = w(ks[2], (D, D))                  # torch: (D, D)
    out_b = w(ks[3], (D,), 0.02)
    w1 = w(ks[4], (H4, D))                    # torch Linear(d, 4d): (4D, D)
    b1 = w(ks[5], (H4,), 0.02)
    w2 = w(ks[6], (D, H4))                    # torch Linear(4d, d): (D, 4D)
    b2 = w(ks[7], (D,), 0.02)
    ln1_w = 1.0 + w(ks[8], (D,), 0.02)
    ln1_b = w(ks[9], (D,), 0.02)
    ln2_w = 1.0 + w(ks[10], (D,), 0.02)
    ln2_b = w(ks[11], (D,), 0.02)

    wq, wk, wv = in_proj_w[:D], in_proj_w[D:2 * D], in_proj_w[2 * D:]
    bq, bk, bv = in_proj_b[:D], in_proj_b[D:2 * D], in_proj_b[2 * D:]

    r = lambda v: v.reshape(1, -1)
    return dict(
        wq_t=wq.T, bq=r(bq), wk_t=wk.T, bk=r(bk), wv_t=wv.T, bv=r(bv),
        wo_t=out_w.T, bo=r(out_b),
        ln1_w=r(ln1_w), ln1_b=r(ln1_b),
        w1_t=w1.T, b1=r(b1), w2_t=w2.T, b2=r(b2),
        ln2_w=r(ln2_w), ln2_b=r(ln2_b),
    )


def reference(x, cond, p):
    """Pure-JAX f32 reference mirroring the PyTorch module exactly (incl. softmax==1)."""
    q = x @ p["wq_t"] + p["bq"]
    k = cond @ p["wk_t"] + p["bk"]
    v = cond @ p["wv_t"] + p["bv"]
    B = x.shape[0]
    qh = q.reshape(B, N_HEADS, D_HEAD)
    kh = k.reshape(B, N_HEADS, D_HEAD)
    vh = v.reshape(B, N_HEADS, D_HEAD)
    s = jnp.sum(qh * kh, -1) / math.sqrt(D_HEAD)          # (B, H)
    wgt = jnp.exp(s - s)                                   # softmax over one key == 1
    attn_heads = wgt[..., None] * vh
    attn = attn_heads.reshape(B, D_MODEL) @ p["wo_t"] + p["bo"]

    def ln(h, g, b):
        mu = jnp.mean(h, -1, keepdims=True)
        var = jnp.mean((h - mu) ** 2, -1, keepdims=True)
        return (h - mu) * jax.lax.rsqrt(var + LN_EPS) * g + b

    h = ln(x + attn, p["ln1_w"], p["ln1_b"])
    m = jnp.maximum(h @ p["w1_t"] + p["b1"], 0.0) @ p["w2_t"] + p["b2"]
    return ln(h + m, p["ln2_w"], p["ln2_b"])


if __name__ == "__main__":
    key = jax.random.PRNGKey(0)
    kx, kc, kp = jax.random.split(key, 3)

    B = 16  # x and cond_tokens share the leading dim (module contract)
    x = jax.random.normal(kx, (B, D_MODEL), dtype=jnp.float32)
    cond_tokens = jax.random.normal(kc, (B, D_MODEL), dtype=jnp.float32)
    params = make_params(kp)
    weights = prepare_weights(params)   # one-time weight prep, outside the call path

    out = cross_attention_1d(x, cond_tokens, weights)
    out = jax.block_until_ready(out)

    ref = reference(x, cond_tokens, params)
    assert out.shape == (B, D_MODEL)
    # bf16 MXU inputs (f32 accumulation) -> expected abs error ~1e-3 vs f32 reference.
    assert jnp.allclose(out, ref, atol=1e-2, rtol=1e-2), \
        f"max err {jnp.max(jnp.abs(out - ref))}"
    print("KERNEL_OK")
</pallas_src>

<mosaic_0001>
module attributes {stable_mosaic.version = 11 : i64} {
  func.func @_cross_attn_kernel(%arg0: i32, %arg1: memref<8x128xf32, #tpu.memory_space<vmem>>, %arg2: memref<8x128xf32, #tpu.memory_space<vmem>>, %arg3: memref<128x128xbf16, #tpu.memory_space<vmem>>, %arg4: memref<128x128xf32, #tpu.memory_space<vmem>>, %arg5: memref<128x512xbf16, #tpu.memory_space<vmem>>, %arg6: memref<512x128xbf16, #tpu.memory_space<vmem>>, %arg7: memref<8x128xf32, #tpu.memory_space<vmem>>, %arg8: memref<1x512xf32, #tpu.memory_space<vmem>>, %arg9: memref<8x128xf32, #tpu.memory_space<vmem>>) attributes {dimension_semantics = [#tpu.dimension_semantics<parallel>], iteration_bounds = array<i64: 1>, scalar_prefetch = 0 : i64, scratch_operands = 0 : i64, tpu.core_type = #tpu.core_type<tc>, window_params = [{transform_indices = @transform_0, window_bounds = array<i64: 8, 128>}, {transform_indices = @transform_1, window_bounds = array<i64: 8, 128>}, {pipeline_mode = #tpu.pipeline_mode<synchronous>, transform_indices = @transform_2, window_bounds = array<i64: 128, 128>}, {pipeline_mode = #tpu.pipeline_mode<synchronous>, transform_indices = @transform_3, window_bounds = array<i64: 128, 128>}, {pipeline_mode = #tpu.pipeline_mode<synchronous>, transform_indices = @transform_4, window_bounds = array<i64: 128, 512>}, {pipeline_mode = #tpu.pipeline_mode<synchronous>, transform_indices = @transform_5, window_bounds = array<i64: 512, 128>}, {pipeline_mode = #tpu.pipeline_mode<synchronous>, transform_indices = @transform_6, window_bounds = array<i64: 8, 128>}, {pipeline_mode = #tpu.pipeline_mode<synchronous>, transform_indices = @transform_7, window_bounds = array<i64: 1, 512>}, {transform_indices = @transform_8, window_bounds = array<i64: 8, 128>}]} {
    %c0 = arith.constant 0 : index
    %c0_0 = arith.constant 0 : index
    %0 = vector.load %arg1[%c0, %c0_0] : memref<8x128xf32, #tpu.memory_space<vmem>>, vector<8x128xf32>
    %c0_1 = arith.constant 0 : index
    %c0_2 = arith.constant 0 : index
    %1 = vector.load %arg2[%c0_1, %c0_2] : memref<8x128xf32, #tpu.memory_space<vmem>>, vector<8x128xf32>
    %c0_3 = arith.constant 0 : index
    %c0_4 = arith.constant 0 : index
    %2 = vector.load %arg7[%c0_3, %c0_4] : memref<8x128xf32, #tpu.memory_space<vmem>>, vector<1x128xf32>
    %c1 = arith.constant 1 : index
    %c0_5 = arith.constant 0 : index
    %3 = vector.load %arg7[%c1, %c0_5] : memref<8x128xf32, #tpu.memory_space<vmem>>, vector<1x128xf32>
    %c2 = arith.constant 2 : index
    %c0_6 = arith.constant 0 : index
    %4 = vector.load %arg7[%c2, %c0_6] : memref<8x128xf32, #tpu.memory_space<vmem>>, vector<1x128xf32>
    %c3 = arith.constant 3 : index
    %c0_7 = arith.constant 0 : index
    %5 = vector.load %arg7[%c3, %c0_7] : memref<8x128xf32, #tpu.memory_space<vmem>>, vector<1x128xf32>
    %c4 = arith.constant 4 : index
    %c0_8 = arith.constant 0 : index
    %6 = vector.load %arg7[%c4, %c0_8] : memref<8x128xf32, #tpu.memory_space<vmem>>, vector<1x128xf32>
    %c5 = arith.constant 5 : index
    %c0_9 = arith.constant 0 : index
    %7 = vector.load %arg7[%c5, %c0_9] : memref<8x128xf32, #tpu.memory_space<vmem>>, vector<1x128xf32>
    %c0_10 = arith.constant 0 : index
    %c0_11 = arith.constant 0 : index
    %8 = vector.load %arg8[%c0_10, %c0_11] : memref<1x512xf32, #tpu.memory_space<vmem>>, vector<1x512xf32>
    %c0_12 = arith.constant 0 : index
    %c0_13 = arith.constant 0 : index
    %9 = vector.load %arg4[%c0_12, %c0_13] : memref<128x128xf32, #tpu.memory_space<vmem>>, vector<128x128xf32>
    %10 = arith.truncf %1 : vector<8x128xf32> to vector<8x128xbf16>
    %c0_14 = arith.constant 0 : index
    %c0_15 = arith.constant 0 : index
    %11 = vector.load %arg3[%c0_14, %c0_15] : memref<128x128xbf16, #tpu.memory_space<vmem>>, vector<128x128xbf16>
    %cst = arith.constant dense<0.000000e+00> : vector<8x128xf32>
    %12 = tpu.matmul %10, %11, %cst {dimension_numbers = #tpu.dot_dimension_numbers<[1], [0], [0], [1], [0, 0, 1, 1], [], []>} : vector<8x128xbf16>, vector<128x128xbf16>, vector<8x128xf32> -> vector<8x128xf32>
    %13 = vector.broadcast %2 : vector<1x128xf32> to vector<8x128xf32>
    %14 = arith.addf %12, %13 : vector<8x128xf32>
    %15 = arith.addf %0, %14 : vector<8x128xf32>
    %cst_16 = arith.constant dense<0.000000e+00> : vector<8x128xf32>
    %16 = tpu.matmul %15, %9, %cst_16 {dimension_numbers = #tpu.dot_dimension_numbers<[1], [0], [0], [1], [0, 0, 1, 1], [], []>} : vector<8x128xf32>, vector<128x128xf32>, vector<8x128xf32> -> vector<8x128xf32>
    %17 = arith.mulf %15, %15 : vector<8x128xf32>
    %cst_17 = arith.constant dense<0.000000e+00> : vector<8x128xf32>
    %18 = tpu.matmul %17, %9, %cst_17 {dimension_numbers = #tpu.dot_dimension_numbers<[1], [0], [0], [1], [0, 0, 1, 1], [], []>} : vector<8x128xf32>, vector<128x128xf32>, vector<8x128xf32> -> vector<8x128xf32>
    %19 = arith.mulf %16, %16 : vector<8x128xf32>
    %20 = arith.subf %18, %19 : vector<8x128xf32>
    %21 = arith.subf %15, %16 : vector<8x128xf32>
    %cst_18 = arith.constant 9.99999974E-6 : f32
    %22 = vector.broadcast %cst_18 : f32 to vector<8x128xf32>
    %23 = arith.addf %20, %22 : vector<8x128xf32>
    %24 = math.rsqrt %23 : vector<8x128xf32>
    %25 = arith.mulf %21, %24 : vector<8x128xf32>
    %26 = vector.broadcast %3 : vector<1x128xf32> to vector<8x128xf32>
    %27 = arith.mulf %25, %26 : vector<8x128xf32>
    %28 = vector.broadcast %4 : vector<1x128xf32> to vector<8x128xf32>
    %29 = arith.addf %27, %28 : vector<8x128xf32>
    %30 = arith.truncf %29 : vector<8x128xf32> to vector<8x128xbf16>
    %c0_19 = arith.constant 0 : index
    %c0_20 = arith.constant 0 : index
    %31 = vector.load %arg5[%c0_19, %c0_20] : memref<128x512xbf16, #tpu.memory_space<vmem>>, vector<128x512xbf16>
    %cst_21 = arith.constant dense<0.000000e+00> : vector<8x512xf32>
    %32 = tpu.matmul %30, %31, %cst_21 {dimension_numbers = #tpu.dot_dimension_numbers<[1], [0], [0], [1], [0, 0, 1, 1], [], []>} : vector<8x128xbf16>, vector<128x512xbf16>, vector<8x512xf32> -> vector<8x512xf32>
    %33 = vector.broadcast %8 : vector<1x512xf32> to vector<8x512xf32>
    %34 = arith.addf %32, %33 : vector<8x512xf32>
    %cst_22 = arith.constant 0.000000e+00 : f32
    %35 = vector.broadcast %cst_22 : f32 to vector<8x512xf32>
    %36 = arith.maximumf %34, %35 : vector<8x512xf32>
    %37 = arith.truncf %36 : vector<8x512xf32> to vector<8x512xbf16>
    %c0_23 = arith.constant 0 : index
    %c0_24 = arith.constant 0 : index
    %38 = vector.load %arg6[%c0_23, %c0_24] : memref<512x128xbf16, #tpu.memory_space<vmem>>, vector<512x128xbf16>
    %cst_25 = arith.constant dense<0.000000e+00> : vector<8x128xf32>
    %39 = tpu.matmul %37, %38, %cst_25 {dimension_numbers = #tpu.dot_dimension_numbers<[1], [0], [0], [1], [0, 0, 1, 1], [], []>} : vector<8x512xbf16>, vector<512x128xbf16>, vector<8x128xf32> -> vector<8x128xf32>
    %40 = vector.broadcast %5 : vector<1x128xf32> to vector<8x128xf32>
    %41 = arith.addf %39, %40 : vector<8x128xf32>
    %42 = arith.addf %29, %41 : vector<8x128xf32>
    %cst_26 = arith.constant dense<0.000000e+00> : vector<8x128xf32>
    %43 = tpu.matmul %42, %9, %cst_26 {dimension_numbers = #tpu.dot_dimension_numbers<[1], [0], [0], [1], [0, 0, 1, 1], [], []>} : vector<8x128xf32>, vector<128x128xf32>, vector<8x128xf32> -> vector<8x128xf32>
    %44 = arith.mulf %42, %42 : vector<8x128xf32>
    %cst_27 = arith.constant dense<0.000000e+00> : vector<8x128xf32>
    %45 = tpu.matmul %44, %9, %cst_27 {dimension_numbers = #tpu.dot_dimension_numbers<[1], [0], [0], [1], [0, 0, 1, 1], [], []>} : vector<8x128xf32>, vector<128x128xf32>, vector<8x128xf32> -> vector<8x128xf32>
    %46 = arith.mulf %43, %43 : vector<8x128xf32>
    %47 = arith.subf %45, %46 : vector<8x128xf32>
    %48 = arith.subf %42, %43 : vector<8x128xf32>
    %cst_28 = arith.constant 9.99999974E-6 : f32
    %49 = vector.broadcast %cst_28 : f32 to vector<8x128xf32>
    %50 = arith.addf %47, %49 : vector<8x128xf32>
    %51 = math.rsqrt %50 : vector<8x128xf32>
    %52 = arith.mulf %48, %51 : vector<8x128xf32>
    %53 = vector.broadcast %6 : vector<1x128xf32> to vector<8x128xf32>
    %54 = arith.mulf %52, %53 : vector<8x128xf32>
    %55 = vector.broadcast %7 : vector<1x128xf32> to vector<8x128xf32>
    %56 = arith.addf %54, %55 : vector<8x128xf32>
    %c0_29 = arith.constant 0 : index
    %c0_30 = arith.constant 0 : index
    %57 = vector.load %arg9[%c0_29, %c0_30] : memref<8x128xf32, #tpu.memory_space<vmem>>, vector<8x128xf32>
    tpu.vector_store %arg9[%c0_29, %c0_30], %56 {strides = array<i32>} : memref<8x128xf32, #tpu.memory_space<vmem>>, vector<8x128xf32>,
    return
  }
  func.func @transform_0(%arg0: i32) -> (i32, i32) {
    %c0_i32 = arith.constant 0 : i32
    %c0_i32_0 = arith.constant 0 : i32
    return %arg0, %c0_i32 : i32, i32
  }
  func.func @transform_1(%arg0: i32) -> (i32, i32) {
    %c0_i32 = arith.constant 0 : i32
    %c0_i32_0 = arith.constant 0 : i32
    return %arg0, %c0_i32 : i32, i32
  }
  func.func @transform_2(%arg0: i32) -> (i32, i32) {
    %c0_i32 = arith.constant 0 : i32
    %c0_i32_0 = arith.constant 0 : i32
    %c0_i32_1 = arith.constant 0 : i32
    return %c0_i32, %c0_i32_0 : i32, i32
  }
  func.func @transform_3(%arg0: i32) -> (i32, i32) {
    %c0_i32 = arith.constant 0 : i32
    %c0_i32_0 = arith.constant 0 : i32
    %c0_i32_1 = arith.constant 0 : i32
    return %c0_i32, %c0_i32_0 : i32, i32
  }
  func.func @transform_4(%arg0: i32) -> (i32, i32) {
    %c0_i32 = arith.constant 0 : i32
    %c0_i32_0 = arith.constant 0 : i32
    %c0_i32_1 = arith.constant 0 : i32
    return %c0_i32, %c0_i32_0 : i32, i32
  }
  func.func @transform_5(%arg0: i32) -> (i32, i32) {
    %c0_i32 = arith.constant 0 : i32
    %c0_i32_0 = arith.constant 0 : i32
    %c0_i32_1 = arith.constant 0 : i32
    return %c0_i32, %c0_i32_0 : i32, i32
  }
  func.func @transform_6(%arg0: i32) -> (i32, i32) {
    %c0_i32 = arith.constant 0 : i32
    %c0_i32_0 = arith.constant 0 : i32
    %c0_i32_1 = arith.constant 0 : i32
    return %c0_i32, %c0_i32_0 : i32, i32
  }
  func.func @transform_7(%arg0: i32) -> (i32, i32) {
    %c0_i32 = arith.constant 0 : i32
    %c0_i32_0 = arith.constant 0 : i32
    %c0_i32_1 = arith.constant 0 : i32
    return %c0_i32, %c0_i32_0 : i32, i32
  }
  func.func @transform_8(%arg0: i32) -> (i32, i32) {
    %c0_i32 = arith.constant 0 : i32
    %c0_i32_0 = arith.constant 0 : i32
    return %arg0, %c0_i32 : i32, i32
  }
}

</mosaic_0001>

<bundles_post_ra>
// kernel: tpu_custom_call.1
= control target key start
LH: loop header
LB: loop body
LE: loop exit
PB: predicated region body
PF: predicated region fallthrough
CT: control target
= control target key end

     0   :  { %13 = vsyncpa [#allocation3], 0  ;;  %s2246_s0 = inlined_call_operand.hbm [shape: f32[8,128], index: 0, kind: input, shape index: {}]   ;;  %s2247_s1 = inlined_call_operand.hbm [shape: f32[8,128], index: 1, kind: input, shape index: {}]   ;;  %s2248_s2 = inlined_call_operand.hbm [shape: bf16[128,128], index: 2, kind: input, shape index: {}]   ;;  %s2249_s3 = inlined_call_operand.hbm [shape: f32[128,128], index: 3, kind: input, shape index: {}]   ;;  %s2250_s4 = inlined_call_operand.hbm [shape: bf16[128,512], index: 4, kind: input, shape index: {}]   ;;  %s2251_s5 = inlined_call_operand.hbm [shape: bf16[512,128], index: 5, kind: input, shape index: {}]   ;;  %s2252_s6 = inlined_call_operand.vmem [shape: f32[8,128], index: 6, kind: input, shape index: {}]   ;;  %s2253_s7 = inlined_call_operand.vmem [shape: f32[1,512], index: 7, kind: input, shape index: {}]   ;;  %s2254_s8 = inlined_call_operand.hbm [shape: f32[8,128], index: 8, kind: output, shape index: {}]  }
   0x1   :  { %14 = vsyncpa [#allocation6], 0 }
   0x2   :  { %15 = vsyncpa [#allocation9], 0 }
   0x3   :  { %16 = vsyncpa [#allocation12], 0 }
   0x4   :  { %17 = vsyncpa [#allocation4], 0  ;;  %s1950_s27 = smov [#allocation5]   ;;  %s1951_s29 = smov [#allocation8]  }
   0x5   :  { %s34_s28 = sshll.u32 %s1950_s27, 4  ;;  %s55_s30 = sshll.u32 %s1951_s29, 4  ;;  %s35_s28 = int_to_ptr.vmem [resolvable:$true] %s34_s28  ;;  %s2012_s30 = int_to_ptr.vmem [resolvable:$true] %s55_s30 }
   0x6   :  { %s1786_s11 = scalar_lea.hbm %s2247_s1, 128 }
   0x7   :  { %p1787_p0 = scmp.ne.s32.totalorder %s2247_s1, %s1786_s11  ;;  %p1790_p1 = scmp.lt.u32.totalorder %s1786_s11, %s2247_s1 }
   0x9   :  { %p1792_p2 = pnand %p1790_p1, %p1787_p0 }
   0xb   :  { %1795 = shalt.err (!%p1792_p2)
}
   0xc   :  { %s1796_s16 = scalar_lea.vmem %s35_s28, 128  ;;  %p1801_p4 = scmp.lt.s32.totalorder %s35_s28, %s35_s28 }
   0xd   :  { %p1797_p3 = scmp.ne.s32.totalorder %s35_s28, %s1796_s16  ;;  %p1802_p5 = scmp.lt.s32.totalorder %s1796_s16, %s1796_s16 }
   0xf   :  { %p1803_p6 = por %p1802_p5, %p1801_p4 }
  0x11   :  { %p1804_p7 = pnand %p1803_p6, %p1797_p3 }
  0x13   :  { %1807 = shalt.err (!%p1804_p7)
}
  0x14   :  { %37 = dma.hbm_to_vmem [thread:$0]  %s2247_s1, 128, %s35_s28, [#allocation6]  }
  0x15   :  { %s1808_s21 = scalar_lea.hbm %s2249_s3, 2048 }
  0x16   :  { %p1809_p8 = scmp.ne.s32.totalorder %s2249_s3, %s1808_s21  ;;  %p1812_p9 = scmp.lt.u32.totalorder %s1808_s21, %s2249_s3 }
  0x18   :  { %p1814_p10 = pnand %p1812_p9, %p1809_p8 }
  0x1a   :  { %1817 = shalt.err (!%p1814_p10)
}
  0x1b   :  { %s1818_s26 = scalar_lea.vmem %s2012_s30, 2048  ;;  %p1823_p12 = scmp.lt.s32.totalorder %s2012_s30, %s2012_s30 }
  0x1c   :  { %p1819_p11 = scmp.ne.s32.totalorder %s2012_s30, %s1818_s26  ;;  %p1824_p13 = scmp.lt.s32.totalorder %s1818_s26, %s1818_s26 }
  0x1e   :  { %p1825_p0 = por %p1824_p13, %p1823_p12 }
  0x20   :  { %p1826_p1 = pnand %p1825_p0, %p1819_p11 }
  0x22   :  { %1829 = shalt.err (!%p1826_p1)
}
  0x23   :  { %s1952_s1 = smov 128   ;;  %s1953_s27 = smov 8  }
  0x24   :  { %61 = dma.hbm_to_vmem [thread:$0]  %s2249_s3, 2048, %s2012_s30, [#allocation9], %s1952_s1, %s1952_s1, %s1953_s27  }
  0x25   :  { %s1954_s9 = smov [#allocation2]   ;;  %s1955_s11 = smov [#allocation7]  }
  0x26   :  { %s24_s10 = sshll.u32 %s1954_s9, 4  ;;  %s43_s12 = sshll.u32 %s1955_s11, 4  ;;  %s25_s10 = int_to_ptr.vmem [resolvable:$true] %s24_s10  ;;  %s2043_s12 = int_to_ptr.vmem [resolvable:$true] %s43_s12 }
  0x27   :  { %s1830_s15 = scalar_lea.hbm %s2246_s0, 128 }
  0x28   :  { %p1831_p2 = scmp.ne.s32.totalorder %s2246_s0, %s1830_s15  ;;  %p1834_p3 = scmp.lt.u32.totalorder %s1830_s15, %s2246_s0 }
  0x2a   :  { %p1836_p4 = pnand %p1834_p3, %p1831_p2 }
  0x2c   :  { %1839 = shalt.err (!%p1836_p4)
}
  0x2d   :  { %s1840_s3 = scalar_lea.vmem %s25_s10, 128  ;;  %p1845_p6 = scmp.lt.s32.totalorder %s25_s10, %s25_s10 }
  0x2e   :  { %p1841_p5 = scmp.ne.s32.totalorder %s25_s10, %s1840_s3  ;;  %p1846_p7 = scmp.lt.s32.totalorder %s1840_s3, %s1840_s3 }
  0x30   :  { %p1847_p8 = por %p1846_p7, %p1845_p6 }
  0x32   :  { %p1848_p9 = pnand %p1847_p8, %p1841_p5 }
  0x34   :  { %1851 = shalt.err (!%p1848_p9)
}
  0x35   :  { %27 = dma.hbm_to_vmem [thread:$0]  %s2246_s0, 128, %s25_s10, [#allocation3]  }
  0x36   :  { %s1852_s23 = scalar_lea.hbm %s2248_s2, 1024 }
  0x37   :  { %p1853_p10 = scmp.ne.s32.totalorder %s2248_s2, %s1852_s23  ;;  %p1856_p11 = scmp.lt.u32.totalorder %s1852_s23, %s2248_s2 }
  0x39   :  { %p1858_p12 = pnand %p1856_p11, %p1853_p10 }
  0x3b   :  { %1861 = shalt.err (!%p1858_p12)
}
  0x3c   :  { %s1862_s27 = scalar_lea.vmem %s2043_s12, 1024  ;;  %p1867_p0 = scmp.lt.s32.totalorder %s2043_s12, %s2043_s12 }
  0x3d   :  { %p1863_p13 = scmp.ne.s32.totalorder %s2043_s12, %s1862_s27  ;;  %p1868_p1 = scmp.lt.s32.totalorder %s1862_s27, %s1862_s27 }
  0x3f   :  { %p1869_p2 = por %p1868_p1, %p1867_p0 }
  0x41   :  { %p1870_p3 = pnand %p1869_p2, %p1863_p13 }
  0x43   :  { %1873 = shalt.err (!%p1870_p3)
}
  0x44   :  { %s1956_s0 = smov 64   ;;  %s1957_s28 = smov 4  }
  0x45   :  { %49 = dma.hbm_to_vmem [thread:$0]  %s2248_s2, 1024, %s2043_s12, [#allocation6], %s1956_s0, %s1956_s0, %s1957_s28  }
  0x46   :  { %s1958_s10 = smov [#allocation10]   ;;  %s1874_s15 = scalar_lea.hbm %s2250_s4, 4096 }
  0x47   :  { %s67_s11 = sshll.u32 %s1958_s10, 4  ;;  %p1875_p4 = scmp.ne.s32.totalorder %s2250_s4, %s1874_s15  ;;  %s68_s11 = int_to_ptr.vmem [resolvable:$true] %s67_s11 }
  0x48   :  { %p1878_p5 = scmp.lt.u32.totalorder %s1874_s15, %s2250_s4 }
  0x4a   :  { %p1880_p6 = pnand %p1878_p5, %p1875_p4 }
  0x4c   :  { %1883 = shalt.err (!%p1880_p6)
}
  0x4d   :  { %s1884_s3 = scalar_lea.vmem %s68_s11, 4096  ;;  %p1889_p8 = scmp.lt.s32.totalorder %s68_s11, %s68_s11 }
  0x4e   :  { %p1885_p7 = scmp.ne.s32.totalorder %s68_s11, %s1884_s3  ;;  %p1890_p9 = scmp.lt.s32.totalorder %s1884_s3, %s1884_s3 }
  0x50   :  { %p1891_p10 = por %p1890_p9, %p1889_p8 }
  0x52   :  { %p1892_p11 = pnand %p1891_p10, %p1885_p7 }
  0x54   :  { %1895 = shalt.err (!%p1892_p11)
}
  0x55   :  { %s1959_s2 = smov 256   ;;  %s1960_s12 = smov 16  }
  0x56   :  { %73 = dma.hbm_to_vmem [thread:$0]  %s2250_s4, 4096, %s68_s11, [#allocation9], %s1959_s2, %s1959_s2, %s1960_s12  }
  0x57   :  { %s1961_s21 = smov [#allocation11]   ;;  %s1896_s25 = scalar_lea.hbm %s2251_s5, 4096 }
  0x58   :  { %s79_s22 = sshll.u32 %s1961_s21, 4  ;;  %p1897_p12 = scmp.ne.s32.totalorder %s2251_s5, %s1896_s25  ;;  %s80_s22 = int_to_ptr.vmem [resolvable:$true] %s79_s22 }
  0x59   :  { %p1900_p13 = scmp.lt.u32.totalorder %s1896_s25, %s2251_s5 }
  0x5b   :  { %p1902_p0 = pnand %p1900_p13, %p1897_p12 }
  0x5d   :  { %1905 = shalt.err (!%p1902_p0)
}
  0x5e   :  { %s1906_s9 = scalar_lea.vmem %s80_s22, 4096  ;;  %p1911_p2 = scmp.lt.s32.totalorder %s80_s22, %s80_s22 }
  0x5f   :  { %p1907_p1 = scmp.ne.s32.totalorder %s80_s22, %s1906_s9  ;;  %p1912_p3 = scmp.lt.s32.totalorder %s1906_s9, %s1906_s9 }
  0x61   :  { %p1913_p4 = por %p1912_p3, %p1911_p2 }
  0x63   :  { %p1914_p5 = pnand %p1913_p4, %p1907_p1 }
  0x65   :  { %1917 = shalt.err (!%p1914_p5)
}
  0x66   :  { %85 = dma.hbm_to_vmem [thread:$0]  %s2251_s5, 4096, %s80_s22, [#allocation12], %s1956_s0, %s1956_s0, %s1957_s28  }
  0x67   :  { %1940 = dma.done.wait [#allocation3], 128  }
  0x68   :  { %1941 = vsyncadd [#allocation3], 4294967168 }
  0x69   :  { %1942 = dma.done.wait [#allocation6], 1152  }
  0x6a   :  { %1943 = vsyncadd [#allocation6], 4294966144 }
  0x6b   :  { %1944 = dma.done.wait [#allocation9], 6144  }
  0x6c   :  { %1945 = vsyncadd [#allocation9], 4294961152 }
  0x6d   :  { %1946 = dma.done.wait [#allocation12], 4096  }
  0x6e   :  { %1947 = vsyncadd [#allocation12], 4294963200  ;;  %v1962_v0 = vmov 0.0   ;;  %vm1963_vm0 = vmmov 0   ;;  %v1964_v1 = vmov 0.0|0.0   ;;  %v1694_v2 = vld [vmem:[#allocation7] sm:$0xff]  }
  0x6f   :  { %1421 = vmatprep.subr.bf16.mxu0 %v1962_v0  ;;  %1437 = vmatprep.mubr.msk.bf16.mxu0 %vm1963_vm0, %v1962_v0  ;;  %v1695_v3 = vld [vmem:[#allocation7 + $0x8] sm:$0xff]   ;;  %v1696_v4 = vld [vmem:[#allocation7 + $0x10] sm:$0xff]   ;;  %v118_v5 = vld [vmem:[#allocation8] sm:$0xff]  ;;  %s1966_s12 = smov [#allocation13]  }
  0x70   :  { %1581 = vmatprep.subr.bf16.mxu1 %v1964_v1  ;;  %1473 = vmatprep.mubr.msk.f32.mxu1 %vm1963_vm0, %v1962_v0  ;;  %v119_v6 = vld [vmem:[#allocation8 + $0x8] sm:$0xff]  ;;  %v120_v8 = vld [vmem:[#allocation8 + $0x10] sm:$0xff]  ;;  %v121_v9 = vld [vmem:[#allocation8 + $0x18] sm:$0xff]  ;;  %s1210_s30 = sshll.u32 %s1966_s12, 4  ;;  %s1211_s30 = int_to_ptr.vmem [resolvable:$true] %s1210_s30 }
  0x71   :  { %1422 = vmatpush3.bf16.msra.mxu0 %v1694_v2  ;;  %v2112_v7 = vpack.c.bf16 %v119_v6, %v118_v5  ;;  %v1697_v10 = vld [vmem:[#allocation7 + $0x18] sm:$0xff]   ;;  %v2116_v11 = vpack.c.bf16 %v121_v9, %v120_v8  ;;  %v122_v12 = vld [vmem:[#allocation8 + $0x20] sm:$0xff]  ;;  %v123_v13 = vld [vmem:[#allocation8 + $0x28] sm:$0xff]  ;;  %s1918_s20 = scalar_lea.vmem %s1211_s30, 128  ;;  %p1923_p7 = scmp.lt.s32.totalorder %s1211_s30, %s1211_s30 }
  0x72   :  { %1423 = vmatprep.subr.bf16.mxu0 %v1962_v0  ;;  %v1698_v14 = vld [vmem:[#allocation7 + $0x20] sm:$0xff]   ;;  %v124_v15 = vld [vmem:[#allocation8 + $0x30] sm:$0xff]  ;;  %v125_v16 = vld [vmem:[#allocation8 + $0x38] sm:$0xff]  ;;  %v2121_v17 = vpack.c.bf16 %v123_v13, %v122_v12  ;;  %p1919_p6 = scmp.ne.s32.totalorder %s1211_s30, %s1918_s20  ;;  %p1924_p8 = scmp.lt.s32.totalorder %s1918_s20, %s1918_s20 }
  0x73   :  { %1583 = vmatpush3.bf16.msra.mxu1 %v2112_v7  ;;  %v1699_v18 = vld [vmem:[#allocation7 + $0x28] sm:$0xff]   ;;  %v126_v19 = vld [vmem:[#allocation8 + $0x40] sm:$0xff]  ;;  %v2126_v21 = vpack.c.bf16 %v125_v16, %v124_v15  ;;  %v1700_v22 = vld [vmem:[#allocation7 + $0x30] sm:$0xff]  }
  0x74   :  { %1584 = vmatprep.subr.bf16.mxu1 %v1964_v1  ;;  %v127_v20 = vld [vmem:[#allocation8 + $0x48] sm:$0xff]  ;;  %v128_v23 = vld [vmem:[#allocation8 + $0x50] sm:$0xff]  ;;  %v129_v24 = vld [vmem:[#allocation8 + $0x58] sm:$0xff]  ;;  %p1925_p9 = por %p1924_p8, %p1923_p7 }
  0x75   :  { %1424 = vmatpush3.bf16.msra.mxu0 %v1695_v3  ;;  %v2131_v25 = vpack.c.bf16 %v127_v20, %v126_v19  ;;  %v1701_v26 = vld [vmem:[#allocation7 + $0x38] sm:$0xff]   ;;  %v130_v28 = vld [vmem:[#allocation8 + $0x60] sm:$0xff]  ;;  %v131_v29 = vld [vmem:[#allocation8 + $0x68] sm:$0xff]  ;;  %v2136_v30 = vpack.c.bf16 %v129_v24, %v128_v23 }
  0x76   :  { %1425 = vmatprep.subr.bf16.mxu0 %v1962_v0  ;;  %v110_v27 = vld [vmem:[#allocation5] sm:$0xff]  ;;  %v2141_v32 = vpack.c.bf16 %v131_v29, %v130_v28  ;;  %v132_v33 = vld [vmem:[#allocation8 + $0x70] sm:$0xff]  ;;  %v1750_v19 = vld [vmem:[#allocation11 + $0x40] sm:$0xff]   ;;  %p1926_p10 = pnand %p1925_p9, %p1919_p6 }
  0x77   :  { %1586 = vmatpush3.bf16.msra.mxu1 %v2116_v11  ;;  %v134_v31 = vpack.c.bf16 %v110_v27, %v110_v27  ;;  %v133_v34 = vld [vmem:[#allocation8 + $0x78] sm:$0xff]  ;;  %v1704_v36 = vld [vmem:[#allocation10 + $0x4] ss:$16 sps:$4 sm:$0xff]   ;;  %v1222_v38 = vld [vmem:[%s2252_s6] ss:$0 sm:$0xff] }
  0x78   :  { %1587 = vmatprep.subr.bf16.mxu1 %v1964_v1  ;;  %v2162_v35 = vpack.c.bf16 %v133_v34, %v132_v33  ;;  %v1707_v37 = vld [vmem:[#allocation10 + $0xc] ss:$16 sps:$4 sm:$0xff]   ;;  %v109_v39 = vld [vmem:[#allocation2] sm:$0xff]  ;;  %v1705_v48 = vld [vmem:[#allocation10 + $0x8] ss:$16 sps:$4 sm:$0xff]  }
  0x79   :  { %1426 = vmatpush3.bf16.msra.mxu0 %v1696_v4  ;;  %v1702_v44 = vld [vmem:[#allocation10] ss:$16 sps:$4 sm:$0xff]   ;;  %v1710_v47 = vld [vmem:[#allocation10 + $0x24] ss:$16 sps:$4 sm:$0xff]   ;;  %v1713_v50 = vld [vmem:[#allocation10 + $0x2c] ss:$16 sps:$4 sm:$0xff]  }
  0x7a   :  { %1427 = vmatprep.subr.bf16.mxu0 %v1962_v0  ;;  %v1708_v51 = vld [vmem:[#allocation10 + $0x20] ss:$16 sps:$4 sm:$0xff]   ;;  %v1711_v52 = vld [vmem:[#allocation10 + $0x28] ss:$16 sps:$4 sm:$0xff]   ;;  %v1716_v53 = vld [vmem:[#allocation10 + $0x44] ss:$16 sps:$4 sm:$0xff]  }
  0x7b   :  { %1589 = vmatpush3.bf16.msra.mxu1 %v2121_v17  ;;  %v1719_v54 = vld [vmem:[#allocation10 + $0x4c] ss:$16 sps:$4 sm:$0xff]   ;;  %v1714_v55 = vld [vmem:[#allocation10 + $0x40] ss:$16 sps:$4 sm:$0xff]   ;;  %v1717_v56 = vld [vmem:[#allocation10 + $0x48] ss:$16 sps:$4 sm:$0xff]  }
  0x7c   :  { %1590 = vmatprep.subr.bf16.mxu1 %v1964_v1  ;;  %v1722_v57 = vld [vmem:[#allocation10 + $0x64] ss:$16 sps:$4 sm:$0xff]   ;;  %v1725_v58 = vld [vmem:[#allocation10 + $0x6c] ss:$16 sps:$4 sm:$0xff]   ;;  %v1720_v59 = vld [vmem:[#allocation10 + $0x60] ss:$16 sps:$4 sm:$0xff]  }
  0x7d   :  { %1428 = vmatpush3.bf16.msra.mxu0 %v1697_v10  ;;  %v1723_v60 = vld [vmem:[#allocation10 + $0x68] ss:$16 sps:$4 sm:$0xff]   ;;  %v1728_v61 = vld [vmem:[#allocation10 + $0x84] ss:$16 sps:$4 sm:$0xff]   ;;  %v1731_v62 = vld [vmem:[#allocation10 + $0x8c] ss:$16 sps:$4 sm:$0xff]  }
  0x7e   :  { %1429 = vmatprep.subr.bf16.mxu0 %v1962_v0  ;;  %v1726_v63 = vld [vmem:[#allocation10 + $0x80] ss:$16 sps:$4 sm:$0xff]   ;;  %v1729_v2 = vld [vmem:[#allocation10 + $0x88] ss:$16 sps:$4 sm:$0xff]   ;;  %v1734_v3 = vld [vmem:[#allocation10 + $0xa4] ss:$16 sps:$4 sm:$0xff]  }
  0x7f   :  { %1592 = vmatpush3.bf16.msra.mxu1 %v2126_v21  ;;  %v1737_v4 = vld [vmem:[#allocation10 + $0xac] ss:$16 sps:$4 sm:$0xff]   ;;  %v1732_v5 = vld [vmem:[#allocation10 + $0xa0] ss:$16 sps:$4 sm:$0xff]   ;;  %v1735_v6 = vld [vmem:[#allocation10 + $0xa8] ss:$16 sps:$4 sm:$0xff]  }
  0x80   :  { %1593 = vmatprep.subr.bf16.mxu1 %v1964_v1  ;;  %v1740_v8 = vld [vmem:[#allocation10 + $0xc4] ss:$16 sps:$4 sm:$0xff]   ;;  %v1743_v9 = vld [vmem:[#allocation10 + $0xcc] ss:$16 sps:$4 sm:$0xff]   ;;  %v1738_v10 = vld [vmem:[#allocation10 + $0xc0] ss:$16 sps:$4 sm:$0xff]  }
  0x81   :  { %1430 = vmatpush3.bf16.msra.mxu0 %v1698_v14  ;;  %v1741_v12 = vld [vmem:[#allocation10 + $0xc8] ss:$16 sps:$4 sm:$0xff]   ;;  %v1744_v13 = vld [vmem:[#allocation10 + $0xe0] ss:$16 sps:$4 sm:$0xff]   ;;  %v1746_v14 = vld [vmem:[#allocation10 + $0xe4] ss:$16 sps:$4 sm:$0xff]  }
  0x82   :  { %1431 = vmatprep.subr.bf16.mxu0 %v1962_v0  ;;  %v1747_v15 = vld [vmem:[#allocation10 + $0xe8] ss:$16 sps:$4 sm:$0xff]   ;;  %v1749_v16 = vld [vmem:[#allocation10 + $0xec] ss:$16 sps:$4 sm:$0xff]   ;;  %v1751_v20 = vld [vmem:[#allocation11 + $0xc0] sm:$0xff]  }
  0x83   :  { %1595 = vmatpush3.bf16.msra.mxu1 %v2131_v25  ;;  %v1231_v34 = vld [vmem:[%s2252_s6 + $0x1] ss:$0 sm:$0xff] }
  0x84   :  { %1596 = vmatprep.subr.bf16.mxu1 %v1964_v1 }
  0x85   :  { %1432 = vmatpush3.bf16.msra.mxu0 %v1699_v18  ;;  %v1965_v18 = vmov 0  }
  0x86   :  { %1433 = vmatprep.subr.bf16.mxu0 %v1962_v0 }
  0x87   :  { %1598 = vmatpush3.bf16.msra.mxu1 %v2136_v30 }
  0x88   :  { %1599 = vmatprep.subr.bf16.mxu1 %v1964_v1 }
  0x89   :  { %1434 = vmatpush3.bf16.msra.mxu0 %v1700_v22 }
  0x8a   :  { %1435 = vmatprep.subr.bf16.mxu0 %v1962_v0 }
  0x8b   :  { %1601 = vmatpush3.bf16.msra.mxu1 %v2141_v32 }
  0x8c   :  { %1602 = vmatprep.subr.bf16.mxu1 %v1964_v1 }
  0x8d   :  { %1436 = vmatpush3.bf16.msra.mxu0 %v1701_v26 }
  0x8e   :  { %1605 = vmatprep.subr.bf16.mxu0 %v1964_v1 }
  0x8f   :  { %1604 = vmatpush3.bf16.msra.mxu1 %v2162_v35 }
  0x90   :  { %1438 = vmatmul.mubr.bf16.vlgmr.msra.gmra.mrb[0].mxu0 %v134_v31  ;;  %615 = vmatprep.subr.bf16.mxu1 %v1704_v36 }
  0x91   :  { %1607 = vmatpush3.bf16.msra.mxu0 %v2112_v7  ;;  %1508 = vmatprep.mubr.msk.f32.mxu0 %vm1963_vm0, %v1962_v0 }
  0x92   :  { %1608 = vmatprep.subr.bf16.mxu0 %v1964_v1 }
  0x95   :  { %1610 = vmatpush3.bf16.msra.mxu0 %v2116_v11 }
  0x96   :  { %1611 = vmatprep.subr.bf16.mxu0 %v1964_v1 }
  0x99   :  { %1613 = vmatpush3.bf16.msra.mxu0 %v2121_v17 }
  0x9a   :  { %1614 = vmatprep.subr.bf16.mxu0 %v1964_v1 }
  0x9d   :  { %1616 = vmatpush3.bf16.msra.mxu0 %v2126_v21 }
  0x9e   :  { %1617 = vmatprep.subr.bf16.mxu0 %v1964_v1 }
  0xa1   :  { %1619 = vmatpush3.bf16.msra.mxu0 %v2131_v25 }
  0xa2   :  { %1620 = vmatprep.subr.bf16.mxu0 %v1964_v1 }
  0xa5   :  { %1622 = vmatpush3.bf16.msra.mxu0 %v2136_v30 }
  0xa6   :  { %1623 = vmatprep.subr.bf16.mxu0 %v1964_v1 }
  0xa9   :  { %1625 = vmatpush3.bf16.msra.mxu0 %v2141_v32 }
  0xaa   :  { %1626 = vmatprep.subr.bf16.mxu0 %v1964_v1 }
  0xad   :  { %1628 = vmatpush3.bf16.msra.mxu0 %v2162_v35 }
  0xae   :  { %656 = vmatprep.subr.bf16.mxu0 %v1707_v37  ;;  %v1232_v37 = vld [vmem:[%s2252_s6 + $0x2] ss:$0 sm:$0xff] }
 0x163   :  { %v237_v40 = vpop.f32.mrb[0].mxu0 }
 0x164   :  { %v238_v41 = vadd.f32 %v1222_v38, %v237_v40  ;;  %v1439_v42 = vpop.f32.mrb[1].mxu0  ;;  %v1752_v40 = vld [vmem:[#allocation11] sm:$0xff]  }
 0x165   :  { %v240_v43 = vpop.f32.mrb[2].mxu0 }
 0x166   :  { %v2169_v45 = vadd.f32 %v238_v41, %v109_v39  ;;  %v1440_v46 = vpop.f32.mrb[3].mxu0  ;;  %v1753_v41 = vld [vmem:[#allocation11 + $0x80] sm:$0xff]   ;;  %v1754_v43 = vld [vmem:[#allocation11 + $0x48] sm:$0xff]  }
 0x167   :  { %v1757_v46 = vld [vmem:[#allocation11 + $0x88] sm:$0xff]  }
 0x168   :  { %v314_v49 = vmul.f32 %v2169_v45, %v2169_v45  ;;  %1474 = vmatmul.mubr.f32.vlgmr.msra.gmra.mrb[0].mxu1 %v2169_v45 }
 0x169   :  { %616 = vmatpush1.bf16.msra.mxu1 %v1702_v44  ;;  %647 = vmatprep.mubr.bf16.mxu1 %v1965_v18  ;;  %v1755_v44 = vld [vmem:[#allocation11 + $0xc8] sm:$0xff]  }
 0x16a   :  { %1509 = vmatmul.mubr.f32.vlgmr.msra.gmra.mrb[4].mxu0 %v314_v49  ;;  %617 = vmatprep.subr.bf16.mxu1 %v1710_v47  ;;  %v1758_v47 = vld [vmem:[#allocation11 + $0x50] sm:$0xff]  }
 0x16b   :  { %657 = vmatpush1.bf16.msra.mxu0 %v1705_v48  ;;  %688 = vmatprep.mubr.bf16.mxu0 %v1965_v18  ;;  %v1759_v48 = vld [vmem:[#allocation11 + $0xd0] sm:$0xff]  }
 0x16c   :  { %658 = vmatprep.subr.bf16.mxu0 %v1713_v50  ;;  %v1760_v49 = vld [vmem:[#allocation11 + $0x10] sm:$0xff]  }
 0x16d   :  { %618 = vmatpush1.bf16.msra.mxu1 %v1708_v51  ;;  %v1761_v50 = vld [vmem:[#allocation11 + $0x90] sm:$0xff]   ;;  %v1762_v51 = vld [vmem:[#allocation11 + $0x58] sm:$0xff]  }
 0x16e   :  { %619 = vmatprep.subr.bf16.mxu1 %v1716_v53  ;;  %v1764_v53 = vld [vmem:[#allocation11 + $0x18] sm:$0xff]  }
 0x16f   :  { %659 = vmatpush1.bf16.msra.mxu0 %v1711_v52  ;;  %v1763_v52 = vld [vmem:[#allocation11 + $0xd8] sm:$0xff]  }
 0x170   :  { %660 = vmatprep.subr.bf16.mxu0 %v1719_v54  ;;  %v1765_v54 = vld [vmem:[#allocation11 + $0x98] sm:$0xff]  }
 0x171   :  { %620 = vmatpush1.bf16.msra.mxu1 %v1714_v55  ;;  %v1766_v55 = vld [vmem:[#allocation11 + $0x60] sm:$0xff]  }
 0x172   :  { %621 = vmatprep.subr.bf16.mxu1 %v1722_v57  ;;  %v1768_v57 = vld [vmem:[#allocation11 + $0x20] sm:$0xff]  }
 0x173   :  { %661 = vmatpush1.bf16.msra.mxu0 %v1717_v56  ;;  %v1767_v56 = vld [vmem:[#allocation11 + $0xe0] sm:$0xff]  }
 0x174   :  { %662 = vmatprep.subr.bf16.mxu0 %v1725_v58  ;;  %v1769_v58 = vld [vmem:[#allocation11 + $0xa0] sm:$0xff]  }
 0x175   :  { %622 = vmatpush1.bf16.msra.mxu1 %v1720_v59  ;;  %v1770_v59 = vld [vmem:[#allocation11 + $0x68] sm:$0xff]  }
 0x176   :  { %623 = vmatprep.subr.bf16.mxu1 %v1728_v61  ;;  %v1772_v61 = vld [vmem:[#allocation11 + $0x28] sm:$0xff]  }
 0x177   :  { %663 = vmatpush1.bf16.msra.mxu0 %v1723_v60  ;;  %v1771_v60 = vld [vmem:[#allocation11 + $0xe8] sm:$0xff]  }
 0x178   :  { %664 = vmatprep.subr.bf16.mxu0 %v1731_v62  ;;  %v1773_v62 = vld [vmem:[#allocation11 + $0xa8] sm:$0xff]  }
 0x179   :  { %624 = vmatpush1.bf16.msra.mxu1 %v1726_v63  ;;  %v1774_v63 = vld [vmem:[#allocation11 + $0x70] sm:$0xff]  }
 0x17a   :  { %625 = vmatprep.subr.bf16.mxu1 %v1734_v3  ;;  %v1776_v3 = vld [vmem:[#allocation11 + $0x30] sm:$0xff]  }
 0x17b   :  { %665 = vmatpush1.bf16.msra.mxu0 %v1729_v2  ;;  %v1775_v2 = vld [vmem:[#allocation11 + $0xf0] sm:$0xff]  }
 0x17c   :  { %666 = vmatprep.subr.bf16.mxu0 %v1737_v4  ;;  %v1777_v4 = vld [vmem:[#allocation11 + $0xb0] sm:$0xff]  }
 0x17d   :  { %626 = vmatpush1.bf16.msra.mxu1 %v1732_v5  ;;  %v1778_v5 = vld [vmem:[#allocation11 + $0x78] sm:$0xff]  }
 0x17e   :  { %627 = vmatprep.subr.bf16.mxu1 %v1740_v8  ;;  %v1780_v8 = vld [vmem:[#allocation11 + $0x38] sm:$0xff]  }
 0x17f   :  { %667 = vmatpush1.bf16.msra.mxu0 %v1735_v6  ;;  %v1779_v6 = vld [vmem:[#allocation11 + $0xf8] sm:$0xff]  }
 0x180   :  { %668 = vmatprep.subr.bf16.mxu0 %v1743_v9  ;;  %v1781_v9 = vld [vmem:[#allocation11 + $0xb8] sm:$0xff]  }
 0x181   :  { %628 = vmatpush1.bf16.msra.mxu1 %v1738_v10  ;;  %v435_v10 = vlaneseq }
 0x182   :  { %629 = vmatprep.subr.bf16.mxu1 %v1746_v14 }
 0x183   :  { %669 = vmatpush1.bf16.msra.mxu0 %v1741_v12  ;;  %v436_v12 = vshrl.u32 %v435_v10, 7 }
 0x184   :  { %670 = vmatprep.subr.bf16.mxu0 %v1749_v16 }
 0x185   :  { %630 = vmatpush1.bf16.msra.mxu1 %v1744_v13  ;;  %v437_v13 = vsub.s32 0, %v436_v12  ;;  %v445_v14 = vsub.s32 2, %v436_v12  ;;  %v441_v16 = vsub.s32 1, %v436_v12  ;;  %v449_v18 = vsub.s32 3, %v436_v12 }
 0x186   :  { %1343 = vmatprep.subr.bf16.mxu1 %v1750_v19 }
 0x187   :  { %671 = vmatpush1.bf16.msra.mxu0 %v1747_v15  ;;  %v117_v15 = vld [vmem:[%s2253_s7] sm:$0xf] }
 0x188   :  { %1365 = vmatprep.subr.bf16.mxu0 %v1751_v20  ;;  %v438_v19 = vrot.slane %v117_v15, %v437_v13  ;;  %v446_v20 = vrot.slane %v117_v15, %v445_v14 }
 0x23b   :  { %v310_v22 = vpop.f32.mrb[0].mxu1 }
 0x23c   :  { %v385_v23 = vmul.f32 %v310_v22, %v310_v22  ;;  %v1475_v24 = vpop.f32.mrb[1].mxu1  ;;  %v387_v31 = vsub.f32 %v2169_v45, %v310_v22  ;;  %v1756_v45 = vld [vmem:[#allocation11 + $0x8] sm:$0xff]   ;;  %v442_v22 = vrot.slane %v117_v15, %v441_v16 }
 0x23d   :  { %v381_v26 = vpop.f32.mrb[4].mxu0 }
 0x23e   :  { %v386_v27 = vsub.f32 %v381_v26, %v385_v23  ;;  %v1510_v28 = vpop.f32.mrb[5].mxu0  ;;  %v450_v23 = vrot.slane %v117_v15, %v449_v18 }
 0x240   :  { %v388_v29 = vadd.f32 1e-05, %v386_v27 }
 0x242   :  { %1782 = vrsqrt.f32 %v388_v29 }
 0x24c   :  { %v1783_v33 = vpop.eup %1782 }
 0x24d   :  { %v390_v36 = vmul.f32 %v1783_v33, %v387_v31 }
 0x24f   :  { %v395_v38 = vmul.f32 %v1231_v34, %v390_v36 }
 0x251   :  { %v2181_v39 = vadd.f32 %v1232_v37, %v395_v38 }
 0x253   :  { %v401_v42 = vpack.c.bf16 %v2181_v39, %v2181_v39 }
 0x255   :  { %648 = vmatmul.mubr.bf16.vlgmr.msra.gmra.mrb[4].mxu1 %v401_v42  ;;  %689 = vmatmul.mubr.bf16.vlgmr.msra.gmra.mrb[8].mxu0 %v401_v42 }
 0x256   :  { %1344 = vmatpush3.bf16.msra.mxu1 %v1752_v40  ;;  %1366 = vmatpush3.bf16.msra.mxu0 %v1753_v41 }
 0x257   :  { %1345 = vmatprep.subr.bf16.mxu1 %v1754_v43  ;;  %1367 = vmatprep.subr.bf16.mxu0 %v1755_v44 }
 0x25a   :  { %1346 = vmatpush3.bf16.msra.mxu1 %v1756_v45  ;;  %1368 = vmatpush3.bf16.msra.mxu0 %v1757_v46 }
 0x25b   :  { %1347 = vmatprep.subr.bf16.mxu1 %v1758_v47  ;;  %1369 = vmatprep.subr.bf16.mxu0 %v1759_v48 }
 0x25e   :  { %1348 = vmatpush3.bf16.msra.mxu1 %v1760_v49  ;;  %1370 = vmatpush3.bf16.msra.mxu0 %v1761_v50 }
 0x25f   :  { %1349 = vmatprep.subr.bf16.mxu1 %v1762_v51  ;;  %1371 = vmatprep.subr.bf16.mxu0 %v1763_v52 }
 0x262   :  { %1350 = vmatpush3.bf16.msra.mxu1 %v1764_v53  ;;  %1372 = vmatpush3.bf16.msra.mxu0 %v1765_v54 }
 0x263   :  { %1351 = vmatprep.subr.bf16.mxu1 %v1766_v55  ;;  %1373 = vmatprep.subr.bf16.mxu0 %v1767_v56 }
 0x266   :  { %1352 = vmatpush3.bf16.msra.mxu1 %v1768_v57  ;;  %1374 = vmatpush3.bf16.msra.mxu0 %v1769_v58 }
 0x267   :  { %1353 = vmatprep.subr.bf16.mxu1 %v1770_v59  ;;  %1375 = vmatprep.subr.bf16.mxu0 %v1771_v60 }
 0x26a   :  { %1354 = vmatpush3.bf16.msra.mxu1 %v1772_v61  ;;  %1376 = vmatpush3.bf16.msra.mxu0 %v1773_v62 }
 0x26b   :  { %1355 = vmatprep.subr.bf16.mxu1 %v1774_v63  ;;  %1377 = vmatprep.subr.bf16.mxu0 %v1775_v2  ;;  %v1298_v63 = vld [vmem:[%s2252_s6 + $0x4] ss:$0 sm:$0xff] }
 0x26e   :  { %1356 = vmatpush3.bf16.msra.mxu1 %v1776_v3  ;;  %1378 = vmatpush3.bf16.msra.mxu0 %v1777_v4 }
 0x26f   :  { %1357 = vmatprep.subr.bf16.mxu1 %v1778_v5  ;;  %1379 = vmatprep.subr.bf16.mxu0 %v1779_v6 }
 0x272   :  { %1358 = vmatpush3.bf16.msra.mxu1 %v1780_v8  ;;  %1380 = vmatpush3.bf16.msra.mxu0 %v1781_v9 }
 0x273   :  { %1629 = vmatprep.subr.bf16.mxu1 %v1964_v1  ;;  %1653 = vmatprep.subr.bf16.mxu0 %v1964_v1 }
 0x328   :  { %v649_v24 = vpop.f32.mrb[4].mxu1  ;;  %v690_v26 = vpop.f32.mrb[8].mxu0 }
 0x329   :  { %v650_v27 = vadd.f32 %v649_v24, %v438_v19  ;;  %v691_v28 = vadd.f32 %v690_v26, %v446_v20  ;;  %v651_v29 = vpop.f32.mrb[5].mxu1  ;;  %v692_v31 = vpop.f32.mrb[9].mxu0 }
 0x32a   :  { %v652_v33 = vadd.f32 %v651_v29, %v442_v22  ;;  %v693_v34 = vadd.f32 %v692_v31, %v450_v23  ;;  %v653_v36 = vpop.f32.mrb[6].mxu1  ;;  %v694_v37 = vpop.f32.mrb[10].mxu0 }
 0x32b   :  { %v697_v38 = vmax.f32 %v650_v27, 0.0  ;;  %v699_v40 = vmax.f32 %v691_v28, 0.0  ;;  %v654_v41 = vpop.f32.mrb[7].mxu1  ;;  %v695_v42 = vpop.f32.mrb[11].mxu0 }
 0x32c   :  { %v698_v43 = vmax.f32 %v652_v33, 0.0  ;;  %v700_v44 = vmax.f32 %v693_v34, 0.0 }
 0x32d   :  { %v701_v47 = vpack.c.bf16 %v697_v38, %v697_v38  ;;  %v703_v48 = vpack.c.bf16 %v699_v40, %v699_v40 }
 0x32e   :  { %v702_v45 = vpack.c.bf16 %v698_v43, %v698_v43  ;;  %v704_v46 = vpack.c.bf16 %v700_v44, %v700_v44 }
 0x330   :  { %997 = vmatprep.mubr.bf16.mxu1 %v702_v45  ;;  %1037 = vmatprep.mubr.bf16.mxu0 %v704_v46 }
 0x331   :  { %998 = vmatmul.mubr.bf16.vlgmr.msra.gmra.mrb[8].mxu1 %v701_v47  ;;  %1038 = vmatmul.mubr.bf16.vlgmr.msra.gmra.mrb[12].mxu0 %v703_v48 }
 0x332   :  { %1631 = vmatpush3.bf16.msra.mxu1 %v2112_v7  ;;  %1655 = vmatpush3.bf16.msra.mxu0 %v2112_v7 }
 0x333   :  { %1632 = vmatprep.subr.bf16.mxu1 %v1964_v1  ;;  %1656 = vmatprep.subr.bf16.mxu0 %v1964_v1 }
 0x334   :  { %1543 = vmatprep.mubr.msk.f32.mxu1 %vm1963_vm0, %v1962_v0  ;;  %1578 = vmatprep.mubr.msk.f32.mxu0 %vm1963_vm0, %v1962_v0 }
 0x336   :  { %1634 = vmatpush3.bf16.msra.mxu1 %v2116_v11  ;;  %1658 = vmatpush3.bf16.msra.mxu0 %v2116_v11  ;;  %v1265_v11 = vld [vmem:[%s2252_s6 + $0x3] ss:$0 sm:$0xff] }
 0x337   :  { %1635 = vmatprep.subr.bf16.mxu1 %v1964_v1  ;;  %1659 = vmatprep.subr.bf16.mxu0 %v1964_v1 }
 0x33a   :  { %1637 = vmatpush3.bf16.msra.mxu1 %v2121_v17  ;;  %1661 = vmatpush3.bf16.msra.mxu0 %v2121_v17 }
 0x33b   :  { %1638 = vmatprep.subr.bf16.mxu1 %v1964_v1  ;;  %1662 = vmatprep.subr.bf16.mxu0 %v1964_v1 }
 0x33e   :  { %1640 = vmatpush3.bf16.msra.mxu1 %v2126_v21  ;;  %1664 = vmatpush3.bf16.msra.mxu0 %v2126_v21 }
 0x33f   :  { %1641 = vmatprep.subr.bf16.mxu1 %v1964_v1  ;;  %1665 = vmatprep.subr.bf16.mxu0 %v1964_v1 }
 0x342   :  { %1643 = vmatpush3.bf16.msra.mxu1 %v2131_v25  ;;  %1667 = vmatpush3.bf16.msra.mxu0 %v2131_v25 }
 0x343   :  { %1644 = vmatprep.subr.bf16.mxu1 %v1964_v1  ;;  %1668 = vmatprep.subr.bf16.mxu0 %v1964_v1 }
 0x346   :  { %1646 = vmatpush3.bf16.msra.mxu1 %v2136_v30  ;;  %1670 = vmatpush3.bf16.msra.mxu0 %v2136_v30 }
 0x347   :  { %1647 = vmatprep.subr.bf16.mxu1 %v1964_v1  ;;  %1671 = vmatprep.subr.bf16.mxu0 %v1964_v1 }
 0x34a   :  { %1649 = vmatpush3.bf16.msra.mxu1 %v2141_v32  ;;  %1673 = vmatpush3.bf16.msra.mxu0 %v2141_v32 }
 0x34b   :  { %1650 = vmatprep.subr.bf16.mxu1 %v1964_v1  ;;  %1674 = vmatprep.subr.bf16.mxu0 %v1964_v1 }
 0x34e   :  { %1652 = vmatpush3.bf16.msra.mxu1 %v2162_v35  ;;  %1676 = vmatpush3.bf16.msra.mxu0 %v2162_v35 }
 0x404   :  { %v1359_v0 = vpop.f32.mrb[8].mxu1  ;;  %v1381_v7 = vpop.f32.mrb[12].mxu0 }
 0x405   :  { %v1360_v17 = vpop.f32.mrb[9].mxu1  ;;  %v1382_v21 = vpop.f32.mrb[13].mxu0 }
 0x406   :  { %v1361_v25 = vadd.f32 %v1360_v17, %v1359_v0  ;;  %v1383_v30 = vadd.f32 %v1382_v21, %v1381_v7  ;;  %v1362_v49 = vpop.f32.mrb[10].mxu1  ;;  %v1384_v32 = vpop.f32.mrb[14].mxu0 }
 0x407   :  { %v1363_v50 = vpop.f32.mrb[11].mxu1  ;;  %v1385_v51 = vpop.f32.mrb[15].mxu0 }
 0x408   :  { %v1000_v52 = vadd.f32 %v1361_v25, %v1265_v11 }
 0x40a   :  { %v1040_v1 = vadd.f32 %v1383_v30, %v1000_v52 }
 0x40c   :  { %v1045_v53 = vadd.f32 %v1040_v1, %v2181_v39  ;;  %v1299_v39 = vld [vmem:[%s2252_s6 + $0x5] ss:$0 sm:$0xff] }
 0x40e   :  { %1544 = vmatmul.mubr.f32.vlgmr.msra.gmra.mrb[2].mxu1 %v1045_v53  ;;  %v1116_v35 = vmul.f32 %v1045_v53, %v1045_v53 }
 0x410   :  { %1579 = vmatmul.mubr.f32.vlgmr.msra.gmra.mrb[6].mxu0 %v1116_v35 }
 0x4e1   :  { %v1112_v54 = vpop.f32.mrb[2].mxu1 }
 0x4e2   :  { %v1187_v55 = vmul.f32 %v1112_v54, %v1112_v54  ;;  %v1545_v56 = vpop.f32.mrb[3].mxu1  ;;  %v1189_v61 = vsub.f32 %v1045_v53, %v1112_v54 }
 0x4e3   :  { %v1183_v57 = vpop.f32.mrb[6].mxu0 }
 0x4e4   :  { %v1188_v58 = vsub.f32 %v1183_v57, %v1187_v55  ;;  %v1580_v59 = vpop.f32.mrb[7].mxu0 }
 0x4e6   :  { %v1190_v60 = vadd.f32 1e-05, %v1188_v58 }
 0x4e8   :  { %1784 = vrsqrt.f32 %v1190_v60 }
 0x4f2   :  { %v1785_v62 = vpop.eup %1784 }
 0x4f3   :  { %v1192_v2 = vmul.f32 %v1785_v62, %v1189_v61 }
 0x4f5   :  { %v1197_v3 = vmul.f32 %v1298_v63, %v1192_v2 }
 0x4f7   :  { %v1202_v4 = vadd.f32 %v1299_v39, %v1197_v3 }
 0x4f9   :  { %1203 = vst [vmem:[#allocation13] sm:$0xff] %v1202_v4 }
 0x4fa   :  { %1929 = shalt.err (!%p1926_p10)
}
 0x4fb   :  { %s1930_s23 = scalar_lea.hbm %s2254_s8, 128 }
 0x4fc   :  { %p1931_p11 = scmp.ne.s32.totalorder %s2254_s8, %s1930_s23  ;;  %p1934_p12 = scmp.lt.u32.totalorder %s1930_s23, %s2254_s8 }
 0x4fe   :  { %p1936_p13 = pnand %p1934_p12, %p1931_p11 }
 0x500   :  { %1939 = shalt.err (!%p1936_p13)
}
 0x501   :  { %1213 = dma.vmem_to_hbm [thread:$0]  %s1211_s30, 128, %s2254_s8, [#allocation4]  }
 0x502   :  { %1948 = dma.done.wait [#allocation4], 128  }
 0x503   :  { %1949 = vsyncadd [#allocation4], 4294967168 }
 0x504   :  { %1217 = vsyncpa [#allocation3], 1 }
 0x505   :  { %1218 = vsyncpa [#allocation6], 1 }
 0x506   :  { %1219 = vsyncpa [#allocation9], 1 }
 0x507   :  { %1220 = vsyncpa [#allocation12], 1 }
 0x508   :  { %1221 = vsyncpa [#allocation4], 1 }

</bundles_post_ra>
